<compile_context>
chip_gen: v5e
topology: v5e:2x2
jax: 0.10.0
libtpu: 0.0.40
codegen_flags: <defaults>
</compile_context>

<pallas_src>
import functools

import jax
import jax.numpy as jnp
from jax import lax
from jax.experimental import pallas as pl
from jax.experimental.pallas import tpu as pltpu


# ---------------------------------------------------------------------------
# Fused kernel: per batch element
#   qkv = x @ w_qkv
#   for each head: out_h = softmax(q_h * scale @ k_h^T) @ v_h
#   out = concat_h(out_h) @ w_out + b_out
# ---------------------------------------------------------------------------
def _fused_attention_kernel(x_ref, wqkv_ref, wout_ref, bout_ref, o_ref, *,
                            heads, dim_head, scale):
    x = x_ref[0]                                   # (N, D)
    inner = heads * dim_head

    # qkv projection, f32 accumulation on the MXU.
    qkv = jnp.dot(x, wqkv_ref[...],
                  preferred_element_type=jnp.float32)          # (N, 3*inner)

    head_outs = []
    for h in range(heads):                         # static unroll (heads is small)
        lo = h * dim_head
        # Fold softmax scale into q (N*Dh muls instead of N*N).
        q = qkv[:, lo:lo + dim_head] * scale                   # (N, Dh)
        k = qkv[:, inner + lo:inner + lo + dim_head]           # (N, Dh)
        v = qkv[:, 2 * inner + lo:2 * inner + lo + dim_head]   # (N, Dh)

        # Scores: contract last dims directly (no explicit k.T materialization).
        s = lax.dot_general(q, k, (((1,), (1,)), ((), ())),
                            preferred_element_type=jnp.float32)  # (N, N)

        # Numerically stable softmax; reciprocal on the EUP slot.
        m = jnp.max(s, axis=-1, keepdims=True)
        p = jnp.exp(s - m)
        p = p * pl.reciprocal(jnp.sum(p, axis=-1, keepdims=True), approx=True)

        head_outs.append(jnp.dot(p, v,
                                 preferred_element_type=jnp.float32))  # (N, Dh)

    # Merge heads lane-dense in 'b n (h d)' layout -> directly consumable by
    # the output projection (no head transpose, no HBM round trip).
    attn_out = jnp.concatenate(head_outs, axis=-1)             # (N, inner)

    out = jnp.dot(attn_out.astype(wout_ref.dtype), wout_ref[...],
                  preferred_element_type=jnp.float32) + bout_ref[...]
    o_ref[0] = out.astype(o_ref.dtype)                         # (N, D)

    # Dropout is identity in eval mode (p=0); nothing to do.


# ---------------------------------------------------------------------------
# Forward pass of Attention (attn='trans'): one fused pallas_call over batch.
# ---------------------------------------------------------------------------
def attention_forward(x, params, heads, dim_head):
    B, N, D = x.shape
    inner = heads * dim_head
    scale = dim_head ** (-0.5)

    w_qkv = params["w_qkv"]                    # (D, 3*inner)
    w_out = params["w_out"]                    # (inner, D)
    b_out = params["b_out"].reshape(1, D)      # (1, D)

    kernel = functools.partial(_fused_attention_kernel,
                               heads=heads, dim_head=dim_head, scale=scale)

    return pl.pallas_call(
        kernel,
        out_shape=jax.ShapeDtypeStruct((B, N, D), x.dtype),
        grid=(B,),
        in_specs=[
            # Activations: one batch element per grid step.
            pl.BlockSpec((1, N, D), lambda b: (b, 0, 0)),
            # Weights/bias: constant index_map -> fetched once, stay in VMEM.
            pl.BlockSpec((D, 3 * inner), lambda b: (0, 0)),
            pl.BlockSpec((inner, D), lambda b: (0, 0)),
            pl.BlockSpec((1, D), lambda b: (0, 0)),
        ],
        out_specs=pl.BlockSpec((1, N, D), lambda b: (b, 0, 0)),
        compiler_params=pltpu.CompilerParams(
            dimension_semantics=("parallel",),       # both TCs on v7x megacore
            vmem_limit_bytes=32 * 1024 * 1024,       # safe on v5e/v6e/v7x
        ),
    )(x, w_qkv, w_out, b_out)


# ---------------------------------------------------------------------------
# Pure-JAX reference for verification.
# ---------------------------------------------------------------------------
def attention_reference(x, params, heads, dim_head):
    B, N, D = x.shape
    inner = heads * dim_head
    scale = dim_head ** (-0.5)
    qkv = x @ params["w_qkv"]
    q, k, v = jnp.split(qkv, 3, axis=-1)
    q = q.reshape(B, N, heads, dim_head).transpose(0, 2, 1, 3)
    k = k.reshape(B, N, heads, dim_head).transpose(0, 2, 1, 3)
    v = v.reshape(B, N, heads, dim_head).transpose(0, 2, 1, 3)
    s = jnp.einsum("bhqd,bhkd->bhqk", q, k) * scale
    p = jax.nn.softmax(s, axis=-1)
    o = jnp.einsum("bhqk,bhkd->bhqd", p, v)
    o = o.transpose(0, 2, 1, 3).reshape(B, N, inner)
    return o @ params["w_out"] + params["b_out"]


if __name__ == "__main__":
    # Small shapes consistent with the module.
    B, N, D = 2, 8, 32          # batch, seq, dim
    heads, dim_head = 4, 16     # inner_dim = 64
    inner_dim = heads * dim_head

    key = jax.random.PRNGKey(0)
    kx, kq, kw, kb = jax.random.split(key, 4)

    x = jax.random.normal(kx, (B, N, D), dtype=jnp.float32)

    # Parameters (nn.Linear weights stored transposed so forward is x @ w):
    #   to_qkv: Linear(dim, inner_dim*3, bias=False) -> w_qkv (D, 3*inner)
    #   to_out: Linear(inner_dim, dim)               -> w_out (inner, D), b_out (D,)
    params = {
        "w_qkv": jax.random.normal(kq, (D, 3 * inner_dim), dtype=jnp.float32) * 0.05,
        "w_out": jax.random.normal(kw, (inner_dim, D), dtype=jnp.float32) * 0.05,
        "b_out": jax.random.normal(kb, (D,), dtype=jnp.float32) * 0.05,
    }

    out = attention_forward(x, params, heads, dim_head)
    out = jax.block_until_ready(out)

    ref = attention_reference(x, params, heads, dim_head)
    assert out.shape == (B, N, D)
    # approx=True reciprocal introduces ~1e-4 relative error in the softmax
    # normalization; tolerance set accordingly.
    assert jnp.allclose(out, ref, atol=2e-3, rtol=2e-3), "mismatch vs reference"

    print("KERNEL_OK")
</pallas_src>

<mosaic_0001>
module attributes {stable_mosaic.version = 11 : i64} {
  func.func @_fused_attention_kernel(%arg0: i32, %arg1: memref<1x8x32xf32, #tpu.memory_space<vmem>>, %arg2: memref<32x192xf32, #tpu.memory_space<vmem>>, %arg3: memref<64x32xf32, #tpu.memory_space<vmem>>, %arg4: memref<1x32xf32, #tpu.memory_space<vmem>>, %arg5: memref<1x8x32xf32, #tpu.memory_space<vmem>>) attributes {dimension_semantics = [#tpu.dimension_semantics<parallel>], iteration_bounds = array<i64: 2>, scalar_prefetch = 0 : i64, scratch_operands = 0 : i64, tpu.core_type = #tpu.core_type<tc>, window_params = [{transform_indices = @transform_0, window_bounds = array<i64: 1, 8, 32>}, {pipeline_mode = #tpu.pipeline_mode<synchronous>, transform_indices = @transform_1, window_bounds = array<i64: 32, 192>}, {pipeline_mode = #tpu.pipeline_mode<synchronous>, transform_indices = @transform_2, window_bounds = array<i64: 64, 32>}, {pipeline_mode = #tpu.pipeline_mode<synchronous>, transform_indices = @transform_3, window_bounds = array<i64: 1, 32>}, {transform_indices = @transform_4, window_bounds = array<i64: 1, 8, 32>}]} {
    %c0 = arith.constant 0 : index
    %c0_0 = arith.constant 0 : index
    %c0_1 = arith.constant 0 : index
    %0 = vector.load %arg1[%c0, %c0_0, %c0_1] : memref<1x8x32xf32, #tpu.memory_space<vmem>>, vector<1x8x32xf32>
    %1 = vector.shape_cast %0 : vector<1x8x32xf32> to vector<8x32xf32>
    %c0_2 = arith.constant 0 : index
    %c0_3 = arith.constant 0 : index
    %2 = vector.load %arg2[%c0_2, %c0_3] : memref<32x192xf32, #tpu.memory_space<vmem>>, vector<32x192xf32>
    %cst = arith.constant dense<0.000000e+00> : vector<8x192xf32>
    %3 = tpu.matmul %1, %2, %cst {dimension_numbers = #tpu.dot_dimension_numbers<[1], [0], [0], [1], [0, 0, 1, 1], [], []>} : vector<8x32xf32>, vector<32x192xf32>, vector<8x192xf32> -> vector<8x192xf32>
    %4 = vector.extract_strided_slice %3 {offsets = [0, 0], sizes = [8, 16], strides = [1, 1]} : vector<8x192xf32> to vector<8x16xf32>
    %cst_4 = arith.constant 2.500000e-01 : f32
    %5 = vector.broadcast %cst_4 : f32 to vector<8x16xf32>
    %6 = arith.mulf %4, %5 : vector<8x16xf32>
    %7 = vector.extract_strided_slice %3 {offsets = [0, 64], sizes = [8, 16], strides = [1, 1]} : vector<8x192xf32> to vector<8x16xf32>
    %8 = vector.extract_strided_slice %3 {offsets = [0, 128], sizes = [8, 16], strides = [1, 1]} : vector<8x192xf32> to vector<8x16xf32>
    %cst_5 = arith.constant dense<0.000000e+00> : vector<8x8xf32>
    %9 = tpu.matmul %6, %7, %cst_5 {dimension_numbers = #tpu.dot_dimension_numbers<[1], [1], [0], [0], [0, 0, 1, 0], [], []>} : vector<8x16xf32>, vector<8x16xf32>, vector<8x8xf32> -> vector<8x8xf32>
    %cst_6 = arith.constant dense<0xFF800000> : vector<8xf32>
    %10 = vector.multi_reduction <maximumf>, %9, %cst_6 [1] : vector<8x8xf32> to vector<8xf32>
    %11 = vector.shape_cast %10 : vector<8xf32> to vector<8x1xf32>
    %12 = vector.broadcast %11 : vector<8x1xf32> to vector<8x8xf32>
    %13 = arith.subf %9, %12 : vector<8x8xf32>
    %14 = math.exp %13 : vector<8x8xf32>
    %cst_7 = arith.constant dense<0.000000e+00> : vector<8xf32>
    %15 = vector.multi_reduction <add>, %14, %cst_7 [1] : vector<8x8xf32> to vector<8xf32>
    %16 = vector.shape_cast %15 : vector<8xf32> to vector<8x1xf32>
    %17 = tpu.reciprocal %16 {approx = true} : vector<8x1xf32> -> vector<8x1xf32>
    %18 = vector.broadcast %17 : vector<8x1xf32> to vector<8x8xf32>
    %19 = arith.mulf %14, %18 : vector<8x8xf32>
    %cst_8 = arith.constant dense<0.000000e+00> : vector<8x16xf32>
    %20 = tpu.matmul %19, %8, %cst_8 {dimension_numbers = #tpu.dot_dimension_numbers<[1], [0], [0], [1], [0, 0, 1, 1], [], []>} : vector<8x8xf32>, vector<8x16xf32>, vector<8x16xf32> -> vector<8x16xf32>
    %21 = vector.extract_strided_slice %3 {offsets = [0, 16], sizes = [8, 16], strides = [1, 1]} : vector<8x192xf32> to vector<8x16xf32>
    %cst_9 = arith.constant 2.500000e-01 : f32
    %22 = vector.broadcast %cst_9 : f32 to vector<8x16xf32>
    %23 = arith.mulf %21, %22 : vector<8x16xf32>
    %24 = vector.extract_strided_slice %3 {offsets = [0, 80], sizes = [8, 16], strides = [1, 1]} : vector<8x192xf32> to vector<8x16xf32>
    %25 = vector.extract_strided_slice %3 {offsets = [0, 144], sizes = [8, 16], strides = [1, 1]} : vector<8x192xf32> to vector<8x16xf32>
    %cst_10 = arith.constant dense<0.000000e+00> : vector<8x8xf32>
    %26 = tpu.matmul %23, %24, %cst_10 {dimension_numbers = #tpu.dot_dimension_numbers<[1], [1], [0], [0], [0, 0, 1, 0], [], []>} : vector<8x16xf32>, vector<8x16xf32>, vector<8x8xf32> -> vector<8x8xf32>
    %cst_11 = arith.constant dense<0xFF800000> : vector<8xf32>
    %27 = vector.multi_reduction <maximumf>, %26, %cst_11 [1] : vector<8x8xf32> to vector<8xf32>
    %28 = vector.shape_cast %27 : vector<8xf32> to vector<8x1xf32>
    %29 = vector.broadcast %28 : vector<8x1xf32> to vector<8x8xf32>
    %30 = arith.subf %26, %29 : vector<8x8xf32>
    %31 = math.exp %30 : vector<8x8xf32>
    %cst_12 = arith.constant dense<0.000000e+00> : vector<8xf32>
    %32 = vector.multi_reduction <add>, %31, %cst_12 [1] : vector<8x8xf32> to vector<8xf32>
    %33 = vector.shape_cast %32 : vector<8xf32> to vector<8x1xf32>
    %34 = tpu.reciprocal %33 {approx = true} : vector<8x1xf32> -> vector<8x1xf32>
    %35 = vector.broadcast %34 : vector<8x1xf32> to vector<8x8xf32>
    %36 = arith.mulf %31, %35 : vector<8x8xf32>
    %cst_13 = arith.constant dense<0.000000e+00> : vector<8x16xf32>
    %37 = tpu.matmul %36, %25, %cst_13 {dimension_numbers = #tpu.dot_dimension_numbers<[1], [0], [0], [1], [0, 0, 1, 1], [], []>} : vector<8x8xf32>, vector<8x16xf32>, vector<8x16xf32> -> vector<8x16xf32>
    %38 = vector.extract_strided_slice %3 {offsets = [0, 32], sizes = [8, 16], strides = [1, 1]} : vector<8x192xf32> to vector<8x16xf32>
    %cst_14 = arith.constant 2.500000e-01 : f32
    %39 = vector.broadcast %cst_14 : f32 to vector<8x16xf32>
    %40 = arith.mulf %38, %39 : vector<8x16xf32>
    %41 = vector.extract_strided_slice %3 {offsets = [0, 96], sizes = [8, 16], strides = [1, 1]} : vector<8x192xf32> to vector<8x16xf32>
    %42 = vector.extract_strided_slice %3 {offsets = [0, 160], sizes = [8, 16], strides = [1, 1]} : vector<8x192xf32> to vector<8x16xf32>
    %cst_15 = arith.constant dense<0.000000e+00> : vector<8x8xf32>
    %43 = tpu.matmul %40, %41, %cst_15 {dimension_numbers = #tpu.dot_dimension_numbers<[1], [1], [0], [0], [0, 0, 1, 0], [], []>} : vector<8x16xf32>, vector<8x16xf32>, vector<8x8xf32> -> vector<8x8xf32>
    %cst_16 = arith.constant dense<0xFF800000> : vector<8xf32>
    %44 = vector.multi_reduction <maximumf>, %43, %cst_16 [1] : vector<8x8xf32> to vector<8xf32>
    %45 = vector.shape_cast %44 : vector<8xf32> to vector<8x1xf32>
    %46 = vector.broadcast %45 : vector<8x1xf32> to vector<8x8xf32>
    %47 = arith.subf %43, %46 : vector<8x8xf32>
    %48 = math.exp %47 : vector<8x8xf32>
    %cst_17 = arith.constant dense<0.000000e+00> : vector<8xf32>
    %49 = vector.multi_reduction <add>, %48, %cst_17 [1] : vector<8x8xf32> to vector<8xf32>
    %50 = vector.shape_cast %49 : vector<8xf32> to vector<8x1xf32>
    %51 = tpu.reciprocal %50 {approx = true} : vector<8x1xf32> -> vector<8x1xf32>
    %52 = vector.broadcast %51 : vector<8x1xf32> to vector<8x8xf32>
    %53 = arith.mulf %48, %52 : vector<8x8xf32>
    %cst_18 = arith.constant dense<0.000000e+00> : vector<8x16xf32>
    %54 = tpu.matmul %53, %42, %cst_18 {dimension_numbers = #tpu.dot_dimension_numbers<[1], [0], [0], [1], [0, 0, 1, 1], [], []>} : vector<8x8xf32>, vector<8x16xf32>, vector<8x16xf32> -> vector<8x16xf32>
    %55 = vector.extract_strided_slice %3 {offsets = [0, 48], sizes = [8, 16], strides = [1, 1]} : vector<8x192xf32> to vector<8x16xf32>
    %cst_19 = arith.constant 2.500000e-01 : f32
    %56 = vector.broadcast %cst_19 : f32 to vector<8x16xf32>
    %57 = arith.mulf %55, %56 : vector<8x16xf32>
    %58 = vector.extract_strided_slice %3 {offsets = [0, 112], sizes = [8, 16], strides = [1, 1]} : vector<8x192xf32> to vector<8x16xf32>
    %59 = vector.extract_strided_slice %3 {offsets = [0, 176], sizes = [8, 16], strides = [1, 1]} : vector<8x192xf32> to vector<8x16xf32>
    %cst_20 = arith.constant dense<0.000000e+00> : vector<8x8xf32>
    %60 = tpu.matmul %57, %58, %cst_20 {dimension_numbers = #tpu.dot_dimension_numbers<[1], [1], [0], [0], [0, 0, 1, 0], [], []>} : vector<8x16xf32>, vector<8x16xf32>, vector<8x8xf32> -> vector<8x8xf32>
    %cst_21 = arith.constant dense<0xFF800000> : vector<8xf32>
    %61 = vector.multi_reduction <maximumf>, %60, %cst_21 [1] : vector<8x8xf32> to vector<8xf32>
    %62 = vector.shape_cast %61 : vector<8xf32> to vector<8x1xf32>
    %63 = vector.broadcast %62 : vector<8x1xf32> to vector<8x8xf32>
    %64 = arith.subf %60, %63 : vector<8x8xf32>
    %65 = math.exp %64 : vector<8x8xf32>
    %cst_22 = arith.constant dense<0.000000e+00> : vector<8xf32>
    %66 = vector.multi_reduction <add>, %65, %cst_22 [1] : vector<8x8xf32> to vector<8xf32>
    %67 = vector.shape_cast %66 : vector<8xf32> to vector<8x1xf32>
    %68 = tpu.reciprocal %67 {approx = true} : vector<8x1xf32> -> vector<8x1xf32>
    %69 = vector.broadcast %68 : vector<8x1xf32> to vector<8x8xf32>
    %70 = arith.mulf %65, %69 : vector<8x8xf32>
    %cst_23 = arith.constant dense<0.000000e+00> : vector<8x16xf32>
    %71 = tpu.matmul %70, %59, %cst_23 {dimension_numbers = #tpu.dot_dimension_numbers<[1], [0], [0], [1], [0, 0, 1, 1], [], []>} : vector<8x8xf32>, vector<8x16xf32>, vector<8x16xf32> -> vector<8x16xf32>
    %72 = tpu.concatenate %20, %37, %54, %71 in 1 : vector<8x16xf32>, vector<8x16xf32>, vector<8x16xf32>, vector<8x16xf32> -> vector<8x64xf32>
    %c0_24 = arith.constant 0 : index
    %c0_25 = arith.constant 0 : index
    %73 = vector.load %arg3[%c0_24, %c0_25] : memref<64x32xf32, #tpu.memory_space<vmem>>, vector<64x32xf32>
    %cst_26 = arith.constant dense<0.000000e+00> : vector<8x32xf32>
    %74 = tpu.matmul %72, %73, %cst_26 {dimension_numbers = #tpu.dot_dimension_numbers<[1], [0], [0], [1], [0, 0, 1, 1], [], []>} : vector<8x64xf32>, vector<64x32xf32>, vector<8x32xf32> -> vector<8x32xf32>
    %c0_27 = arith.constant 0 : index
    %c0_28 = arith.constant 0 : index
    %75 = vector.load %arg4[%c0_27, %c0_28] : memref<1x32xf32, #tpu.memory_space<vmem>>, vector<1x32xf32>
    %76 = vector.broadcast %75 : vector<1x32xf32> to vector<8x32xf32>
    %77 = arith.addf %74, %76 : vector<8x32xf32>
    %c0_29 = arith.constant 0 : index
    %c0_30 = arith.constant 0 : index
    %c0_31 = arith.constant 0 : index
    %78 = vector.load %arg5[%c0_29, %c0_30, %c0_31] : memref<1x8x32xf32, #tpu.memory_space<vmem>>, vector<1x8x32xf32>
    %79 = vector.shape_cast %78 : vector<1x8x32xf32> to vector<8x32xf32>
    %80 = vector.shape_cast %77 : vector<8x32xf32> to vector<1x8x32xf32>
    tpu.vector_store %arg5[%c0_29, %c0_30, %c0_31], %80 {strides = array<i32>} : memref<1x8x32xf32, #tpu.memory_space<vmem>>, vector<1x8x32xf32>,
    return
  }
  func.func @transform_0(%arg0: i32) -> (i32, i32, i32) {
    %c0_i32 = arith.constant 0 : i32
    %c0_i32_0 = arith.constant 0 : i32
    %c0_i32_1 = arith.constant 0 : i32
    return %arg0, %c0_i32, %c0_i32_0 : i32, i32, i32
  }
  func.func @transform_1(%arg0: i32) -> (i32, i32) {
    %c0_i32 = arith.constant 0 : i32
    %c0_i32_0 = arith.constant 0 : i32
    %c0_i32_1 = arith.constant 0 : i32
    return %c0_i32, %c0_i32_0 : i32, i32
  }
  func.func @transform_2(%arg0: i32) -> (i32, i32) {
    %c0_i32 = arith.constant 0 : i32
    %c0_i32_0 = arith.constant 0 : i32
    %c0_i32_1 = arith.constant 0 : i32
    return %c0_i32, %c0_i32_0 : i32, i32
  }
  func.func @transform_3(%arg0: i32) -> (i32, i32) {
    %c0_i32 = arith.constant 0 : i32
    %c0_i32_0 = arith.constant 0 : i32
    %c0_i32_1 = arith.constant 0 : i32
    return %c0_i32, %c0_i32_0 : i32, i32
  }
  func.func @transform_4(%arg0: i32) -> (i32, i32, i32) {
    %c0_i32 = arith.constant 0 : i32
    %c0_i32_0 = arith.constant 0 : i32
    %c0_i32_1 = arith.constant 0 : i32
    return %arg0, %c0_i32, %c0_i32_0 : i32, i32, i32
  }
}

</mosaic_0001>

<bundles_post_ra>
// kernel: tpu_custom_call.1
= control target key start
LH: loop header
LB: loop body
LE: loop exit
PB: predicated region body
PF: predicated region fallthrough
CT: control target
= control target key end

     0   :  { %9 = vsyncpa [#allocation3], 0  ;;  %s995_s0 = inlined_call_operand.vmem [shape: f32[2,8,32], index: 0, kind: input, shape index: {}]   ;;  %s996_s1 = inlined_call_operand.vmem [shape: f32[32,192], index: 1, kind: input, shape index: {}]   ;;  %s997_s2 = inlined_call_operand.vmem [shape: f32[64,32], index: 2, kind: input, shape index: {}]   ;;  %s998_s3 = inlined_call_operand.vmem [shape: f32[1,32], index: 3, kind: input, shape index: {}]   ;;  %s999_s4 = inlined_call_operand.hbm [shape: f32[2,8,32], index: 4, kind: output, shape index: {}]  }
   0x1   :  { %11 = vsyncpa [#allocation3 + $0x1], 0  ;;  %s819_s15 = smov 0   ;;  %s821_s16 = smov 0  }
   0x2   :  { %s823_s17 = smov 0   ;;  %s825_s18 = smov 0  }
   0x3 LB: > { %s840_s19 = sadd.s32 4294967295, %s785_s18   ;;  %s635_s20 = sadd.s32 4294967294, %s785_s18   ;;  %s785_s18 = sphi %s825_s18, %s1005_s18   ;;  %s781_s17 = sphi %s823_s17, %s1004_s17   ;;  %s777_s16 = sphi %s821_s16, %s1003_s16   ;;  %s773_s15 = sphi %s819_s15, %s1002_s15  }
   0x4   : > { %s844_s21 = sadd.s32 1, %s785_s18   ;;  %s113_s22 = sadd.s32 1, %s781_s17 }
   0x5   : > { %s110_s23 = ssub.s32 %s785_s18, %s844_s21  ;;  %p123_p0 = scmp.ne.s32.totalorder %s781_s17, %s777_s16 }
   0x6   : > { %p111_p1 = scmp.eq.s32.totalorder %s110_s23, 0  ;;  %p124_p2 = scmp.eq.s32.totalorder %s840_s19, 1 }
   0x7   : > { %p129_p3 = scmp.ne.s32.totalorder %s777_s16, %s773_s15  ;;  %p130_p4 = scmp.eq.s32.totalorder %s635_s20, 1 }
   0x8   : > { %s855_s24 = scalar_select %p111_p1, %s781_s17, %s113_s22  }
   0x9   : > { %p857_p5 = por %p124_p2, %p123_p0  ;;  %p861_p6 = por %p130_p4, %p129_p3 }
   0xa   : > { %p638_p7 = scmp.ge.s32.totalorder %s785_s18, 1  ;;  %p164_p8 = scmp.lt.s32.totalorder %s785_s18, 3 }
   0xc   : > { %p165_p9 = pnand %p638_p7, %p164_p8 }
   0xd   : > { %p189_p10 = scmp.lt.s32.totalorder (!%p165_p9), %s840_s19, 1  ;;  %s787_s14 = smov (!%p165_p9), 64  }
   0xe   : > { %168 = sbr.rel (%p165_p9) target bundleno = 1468 (0x5bc), region = 36  ;;  %s788_s20 = smov (!%p165_p9), 112  }
   0xf   : > { %s789_s22 = smov (!%p165_p9), 16   ;;  %s790_s23 = smov (!%p165_p9), 80  }
  0x10   : > { %s791_s27 = smov (!%p165_p9), 32   ;;  %s792_s28 = smov (!%p165_p9), 96  }
  0x11   : > { %s793_s11 = smov (!%p165_p9), 48   ;;  %s743_s9 = scalar_lea.hbm (!%p165_p9), %s999_s4, 16 }
  0x13   : > { %v200_v0 = vld [vmem:[%s996_s1 + $0x30] sm:$0xff]  ;;  %v198_v1 = vld [vmem:[%s996_s1 + $0x20] sm:$0xff]  ;;  %s190_s7 = scalar_select %p189_p10, %s840_s19, 1  ;;  %vm202_vm0 = vcmask 261120   ;;  %vm250_vm1 = vcmask 130048   ;;  %vm276_vm2 = vcmask 64512  }
  0x14   : > { %218 = vmatpush.msra.mxu1 %v200_v0  ;;  %v196_v2 = vld [vmem:[%s996_s1 + $0x10] sm:$0xff]  ;;  %v194_v3 = vld [vmem:[%s996_s1] sm:$0xff]  ;;  %v201_v17 = vld [vmem:[%s996_s1 + $0x38] sm:$0xff]  ;;  %vm521_vm3 = vcmask 392192   ;;  %vm535_vm4 = vcmask 523264  }
  0x15   : > { %s640_s10 = sshll.u32 %s190_s7, 3  ;;  %v199_v18 = vld [vmem:[%s996_s1 + $0x28] sm:$0xff]  ;;  %v197_v19 = vld [vmem:[%s996_s1 + $0x18] sm:$0xff] }
  0x16   : > { %219 = vmatpush.msra.mxu1 %v198_v1  ;;  %s192_s13 = scalar_lea.vmem %s995_s0, %s640_s10  ;;  %v195_v20 = vld [vmem:[%s996_s1 + $0x8] sm:$0xff] }
  0x17   : > { %v193_v4 = vld [vmem:[%s192_s13] sm:$0xff]  ;;  %s657_s13 = sshll.u32 %s840_s19, 3 }
  0x18   : > { %220 = vmatpush.msra.mxu1 %v196_v2  ;;  %v530_v2 = vld [vmem:[%s997_s2 + $0x38] sm:$0xff] }
  0x1a   : > { %221 = vmatpush.msra.mxu1 %v194_v3  ;;  %v529_v3 = vld [vmem:[%s997_s2 + $0x30] sm:$0xff] }
  0x1b   : > { %641 = vmatmul.msk.f32.vlgmr.msra.gmra.mxu1 %vm202_vm0, %v193_v4 }
  0x1c   : > { %238 = vmatpush.msrb.mxu1 %v201_v17 }
  0x1e   : > { %239 = vmatpush.msrb.mxu1 %v199_v18 }
  0x20   : > { %240 = vmatpush.msrb.mxu1 %v197_v19 }
  0x22   : > { %241 = vmatpush.msrb.mxu1 %v195_v20 }
  0x23   : > { %642 = vmatmul.msk.f32.vlgmr.msrb.gmra.mxu1 %vm202_vm0, %v193_v4  ;;  %v528_v4 = vld [vmem:[%s997_s2 + $0x28] sm:$0xff] }
  0x98   : > { %v223_v5 = vpop.f32.mrf.mxu1 }
  0x99   : > { %248 = vrot.lane.b32.xlu0 %v223_v5, %s787_s14  ;;  %v246_v6 = vmul.f32 0.25, %v223_v5 }
  0x9b   : > { %311 = vrot.lane.b32.xlu2 %v246_v6, %s788_s20 }
  0xa0   : > { %v243_v26 = vpop.f32.mrf.mxu1 }
  0xa1   : > { %306 = vmatpush.msra.mxu3 %v243_v26 }
  0xa3   : > { %444 = vrot.lane.b32.xlu2 %v223_v5, %s789_s22 }
  0xab   : > { %442 = vrot.lane.b32.xlu2 %v246_v6, %s790_s23 }
  0xb3   : > { %379 = vrot.lane.b32.xlu2 %v223_v5, %s791_s27 }
  0xbb   : > { %377 = vrot.lane.b32.xlu2 %v246_v6, %s792_s28 }
  0xf5   : > { %v312_v7 = vpop.permute.xlu2 %311 }
  0xfd   : > { %v445_v8 = vpop.permute.xlu2 %444 }
 0x105   : > { %v443_v9 = vpop.permute.xlu2 %442 }
 0x10b   : > { %v249_v10 = vpop.permute.xlu0 %248 }
 0x10c   : > { %643 = vmatpush.xpose.msk.msra.mxu2 %vm250_vm1, %v249_v10 }
 0x10d   : > { %v380_v11 = vpop.permute.xlu2 %379 }
 0x10e   : > { %649 = vmatpush.xpose.msk.msra.mxu0 %vm250_vm1, %v380_v11 }
 0x10f   : > { %644 = vmatmul.msk.f32.vlgmr.msra.gmra.mxu2 %vm250_vm1, %v246_v6  ;;  %v526_v6 = vld [vmem:[%s997_s2 + $0x18] sm:$0xff] }
 0x112   : > { %547 = vmatpush.msrb.mxu0 %v530_v2 }
 0x114   : > { %548 = vmatpush.msrb.mxu0 %v529_v3 }
 0x115   : > { %v378_v12 = vpop.permute.xlu2 %377 }
 0x116   : > { %650 = vmatmul.msk.f32.vlgmr.msra.gmra.mxu0 %vm250_vm1, %v378_v12 }
 0x117   : > { %549 = vmatpush.msrb.mxu0 %v528_v4 }
 0x192   : > { %v273_v13 = vpop.f32.mrf.mxu2 }
 0x193   : > { %v277_v14 = vsel %vm276_vm2, %v273_v13, -inf  ;;  %v402_v15 = vpop.f32.mrf.mxu0 }
 0x194   : > { %278 = vmax.xlane.f32.xlu0 %v277_v14  ;;  %v405_v16 = vsel %vm276_vm2, %v402_v15, -inf }
 0x19c   : > { %406 = vmax.xlane.f32.xlu0 %v405_v16  ;;  %v706_v16 = vld [vmem:[%s998_s3] ss:$0 sm:$0xff] }
 0x207   : > { %v279_v21 = vpop.xlane.xlu0 %278 }
 0x208   : > { %v280_v22 = vsub.f32 %v273_v13, %v279_v21 }
 0x20a   : > { %v281_v23 = vmul.f32 1.442695, %v280_v22 }
 0x20c   : > { %707 = vpow2.f32 %v281_v23 }
 0x20f   : > { %v407_v31 = vpop.xlane.xlu0 %406 }
 0x210   : > { %v408_v32 = vsub.f32 %v402_v15, %v407_v31 }
 0x212   : > { %v708_v24 = vpop.eup %707  ;;  %v409_v34 = vmul.f32 1.442695, %v408_v32 }
 0x213   : > { %v283_v25 = vsel %vm276_vm2, %v708_v24, 0.0 }
 0x214   : > { %284 = vadd.xlane.f32.xlu1 %v283_v25 }
 0x22d   : > { %313 = vrot.lane.b32.xlu1 %v223_v5, %s793_s11  ;;  %v527_v5 = vld [vmem:[%s997_s2 + $0x20] sm:$0xff] }
 0x22e   : > { %550 = vmatpush.msrb.mxu0 %v527_v5 }
 0x230   : > { %551 = vmatpush.msrb.mxu0 %v526_v6 }
 0x287   : > { %v285_v27 = vpop.xlane.xlu1 %284 }
 0x288   : > { %709 = vrcp.f32 %v285_v27 }
 0x289   : > { %711 = vpow2.f32 %v409_v34 }
 0x28e   : > { %v710_v28 = vpop.eup %709 }
 0x28f   : > { %v287_v29 = vmul.f32 %v710_v28, %v708_v24  ;;  %v712_v37 = vpop.eup %711 }
 0x290   : > { %v411_v40 = vsel %vm276_vm2, %v712_v37, 0.0 }
 0x291   : > { %645 = vmatmul.msk.f32.vlgmr.msra.gmra.mxu3 %vm276_vm2, %v287_v29 }
 0x29f   : > { %v314_v30 = vpop.permute.xlu1 %313 }
 0x2a0   : > { %646 = vmatpush.xpose.msk.msrb.mxu3 %vm250_vm1, %v314_v30 }
 0x2a3   : > { %647 = vmatmul.msk.f32.vlgmr.msrb.gmra.mxu3 %vm250_vm1, %v312_v7  ;;  %v525_v7 = vld [vmem:[%s997_s2 + $0x10] sm:$0xff] }
 0x2a4   : > { %652 = vmatpush.xpose.msk.msra.mxu3 %vm250_vm1, %v445_v8  ;;  %v524_v8 = vld [vmem:[%s997_s2 + $0x8] sm:$0xff]  ;;  %552 = vmatpush.msrb.mxu0 %v525_v7 }
 0x2a6   : > { %553 = vmatpush.msrb.mxu0 %v524_v8 }
 0x2ab   : > { %653 = vmatmul.msk.f32.vlgmr.msra.gmra.mxu3 %vm250_vm1, %v443_v9  ;;  %v523_v9 = vld [vmem:[%s997_s2] sm:$0xff] }
 0x2ac   : > { %554 = vmatpush.msrb.mxu0 %v523_v9 }
 0x314   : > { %v916_v33 = vpop.f32.mrf.mxu3 }
 0x326   : > { %v336_v35 = vpop.f32.mrf.mxu3 }
 0x327   : > { %v339_v36 = vsel %vm276_vm2, %v336_v35, -inf }
 0x328   : > { %340 = vmax.xlane.f32.xlu1 %v339_v36 }
 0x32e   : > { %v467_v38 = vpop.f32.mrf.mxu3 }
 0x32f   : > { %v470_v39 = vsel %vm276_vm2, %v467_v38, -inf }
 0x330   : > { %471 = vmax.xlane.f32.xlu2 %v470_v39  ;;  %412 = vadd.xlane.f32.xlu1 %v411_v40 }
 0x348   : > { %481 = vrot.lane.b32.xlu2 %v243_v26, %s790_s23  ;;  %s571_s23 = scalar_lea.hbm %s999_s4, %s657_s13 }
 0x349   : > { %416 = vrot.lane.b32.xlu1 %v243_v26, %s792_s28  ;;  %s575_s30 = sshll.u32 %s571_s23, 4  ;;  %s576_s30 = int_to_ptr.hbm [resolvable:$true] %s575_s30 }
 0x34a   : > { %s737_s19 = sshra.s32 %s576_s30, 4  ;;  %s738_s19 = int_to_ptr.hbm [resolvable:$true] %s737_s19 }
 0x34b   : > { %s739_s6 = scalar_lea.hbm %s738_s19, 8  ;;  %p744_p0 = scmp.lt.s32.totalorder %s738_s19, %s999_s4 }
 0x34c   : > { %p740_p11 = scmp.ne.s32.totalorder %s738_s19, %s739_s6  ;;  %p745_p1 = scmp.lt.s32.totalorder %s743_s9, %s739_s6 }
 0x34e   : > { %p741_p12 = pnand %p740_p11, %p857_p5  ;;  %p746_p2 = por %p745_p1, %p744_p0 }
 0x350   : > { %p742_p13 = pneg %p741_p12 }
 0x352   : > { %p747_p3 = pnand %p746_p2, %p742_p13 }
 0x39b   : > { %v341_v41 = vpop.xlane.xlu1 %340 }
 0x39c   : > { %v342_v42 = vsub.f32 %v336_v35, %v341_v41 }
 0x39e   : > { %v343_v43 = vmul.f32 1.442695, %v342_v42 }
 0x3a0   : > { %713 = vpow2.f32 %v343_v43 }
 0x3a3   : > { %v472_v44 = vpop.xlane.xlu2 %471  ;;  %v413_v50 = vpop.xlane.xlu1 %412 }
 0x3a4   : > { %v473_v45 = vsub.f32 %v467_v38, %v472_v44 }
 0x3a6   : > { %v714_v46 = vpop.eup %713  ;;  %v474_v47 = vmul.f32 1.442695, %v473_v45 }
 0x3a7   : > { %v345_v48 = vsel %vm276_vm2, %v714_v46, 0.0 }
 0x3a8   : > { %715 = vpow2.f32 %v474_v47  ;;  %346 = vadd.xlane.f32.xlu0 %v345_v48 }
 0x3a9   : > { %717 = vrcp.f32 %v413_v50 }
 0x3ab   : > { %v482_v60 = vpop.permute.xlu2 %481 }
 0x3ae   : > { %v716_v49 = vpop.eup %715 }
 0x3af   : > { %v476_v51 = vsel %vm276_vm2, %v716_v49, 0.0  ;;  %v718_v52 = vpop.eup %717 }
 0x3b0   : > { %477 = vadd.xlane.f32.xlu0 %v476_v51  ;;  %v415_v53 = vmul.f32 %v718_v52, %v712_v37 }
 0x3bb   : > { %v417_v54 = vpop.permute.xlu1 %416 }
 0x3bc   : > { %437 = vmatpush.msra.mxu1 %v417_v54 }
 0x3bd   : > { %651 = vmatmul.msk.f32.vlgmr.msra.gmra.mxu1 %vm276_vm2, %v415_v53 }
 0x3c4   : > { %351 = vrot.lane.b32.xlu0 %v243_v26, %s788_s20 }
 0x41b   : > { %v347_v55 = vpop.xlane.xlu0 %346 }
 0x41c   : > { %719 = vrcp.f32 %v347_v55 }
 0x422   : > { %v720_v57 = vpop.eup %719 }
 0x423   : > { %v478_v56 = vpop.xlane.xlu0 %477  ;;  %v349_v59 = vmul.f32 %v720_v57, %v714_v46 }
 0x424   : > { %721 = vrcp.f32 %v478_v56 }
 0x42a   : > { %v722_v61 = vpop.eup %721 }
 0x42b   : > { %v480_v62 = vmul.f32 %v722_v61, %v716_v49 }
 0x436   : > { %v352_v58 = vpop.permute.xlu0 %351 }
 0x437   : > { %372 = vmatpush.msrb.mxu2 %v352_v58 }
 0x438   : > { %648 = vmatmul.msk.f32.vlgmr.msrb.gmra.mxu2 %vm276_vm2, %v349_v59 }
 0x439   : > { %502 = vmatpush.msra.mxu2 %v482_v60 }
 0x43a   : > { %v439_v0 = vpop.f32.mrf.mxu1 }
 0x440   : > { %654 = vmatmul.msk.f32.vlgmr.msra.gmra.mxu2 %vm276_vm2, %v480_v62 }
 0x4bb   : > { %v374_v63 = vpop.f32.mrf.mxu2 }
 0x4bc   : > { %508 = vrot.lane.b32.xlu0 %v374_v63, %s789_s22 }
 0x4c3   : > { %v504_v1 = vpop.f32.mrf.mxu2 }
 0x4c4   : > { %516 = vrot.lane.b32.xlu2 %v504_v1, %s793_s11  ;;  %512 = vrot.lane.b32.xlu0 %v439_v0, %s791_s27  ;;  %s186_s11 = sand.u32 1, %s777_s16  }
 0x4c5   : > { %s639_s12 = sshll.u32 %s186_s11, 3  ;;  %s561_s5 = scalar_lea.sflag [#allocation3], %s186_s11 }
 0x4c6   : > { %s188_s29 = scalar_lea.vmem [#allocation2], %s639_s12 }
 0x4c7   : > { %s573_s27 = sshll.u32 %s188_s29, 4  ;;  %s574_s27 = int_to_ptr.vmem [resolvable:$true] %s573_s27 }
 0x51e   : > { %v517_v13 = vpop.permute.xlu2 %516 }
 0x52e   : > { %v509_v10 = vpop.permute.xlu0 %508 }
 0x52f   : > { %v519_v11 = vsel %vm250_vm1, %v916_v33, %v509_v10 }
 0x536   : > { %v513_v12 = vpop.permute.xlu0 %512 }
 0x537   : > { %v520_v14 = vsel %vm202_vm0, %v519_v11, %v513_v12 }
 0x538   : > { %v522_v15 = vsel %vm521_vm3, %v520_v14, %v517_v13 }
 0x539   : > { %655 = vmatmul.msk.f32.vlgmr.msrb.gmra.mxu0 %vm535_vm4, %v522_v15 }
 0x5b6   : > { %v556_v17 = vpop.f32.mrf.mxu0 }
 0x5b7   : > { %v557_v18 = vadd.f32 %v706_v16, %v556_v17 }
 0x5b9   : > { %559 = vst.msk [vmem:[%s188_s29] sm:$0xff] %vm202_vm0, %v557_v18 }
 0x5ba   : > { %750 = shalt.err (!%p747_p3)
}
 0x5bb   : > { %660 = dma.vmem_to_hbm [thread:$0]  (%p857_p5), %s574_s27, 128, %s576_s30, %s561_s5  }
 0x5bc PF: > { %p666_p4 = scmp.ge.s32.totalorder %s785_s18, 2  ;;  %s587_s11 = sand.u32 1, %s773_s15  }
 0x5bd   : > { %s588_s13 = scalar_lea.sflag [#allocation3], %s587_s11 }
 0x5be   : > { %p663_p7 = pnand %p666_p4, %p861_p6 }
 0x5c0   : > { %p664_p8 = pneg %p663_p7 }
 0x5c2   : > { %768 = dma.done.wait (%p664_p8), %s588_s13, 128  }
 0x5c3   : > { %770 = vsyncadd (%p664_p8), %s588_s13, 4294967168  ;;  %p14_p9 = scmp.ge.s32.totalorder %s844_s21, 4   ;;  %s1002_s15 = smov %s777_s16 }
 0x5c4   : > { %s1003_s16 = smov %s781_s17  ;;  %s1004_s17 = smov %s855_s24 }
 0x5c5   : > { %s1005_s18 = smov %s844_s21  ;;  %16 = sbr.rel (!%p14_p9) target bundleno = 3 (0x3), region = 71 }
 0x5ca   :  { %594 = vsyncpa [#allocation3], 1 }
 0x5cb   :  { %596 = vsyncpa [#allocation3 + $0x1], 1 }

</bundles_post_ra>
